<compile_context>
chip_gen: v6e
topology: v6e:2x2x1
jax: 0.10.0
libtpu: 0.0.40
codegen_flags: <defaults>
</compile_context>

<pallas_src>
import jax
import jax.numpy as jnp
from jax.experimental import pallas as pl
from jax.experimental.pallas import tpu as pltpu

LANE = 128  # TPU vreg lane width


def _round_up(x, m):
    return ((x + m - 1) // m) * m


# --------------------------------------------------------------------------
# Kernel
# --------------------------------------------------------------------------
def adversary_kernel(x_ref, vec_ref, mat_ref, out_ref):
    # vec_ref: (5, HP) resident slab = [w1_row; b1; b2; b3; b4]
    # mat_ref: (3, HP, HP) resident slab = [w2; w3; w4] (zero-padded)
    ns = out_ref.shape[1]

    w1 = vec_ref[0:1, :]
    b1 = vec_ref[1:2, :]
    b2 = vec_ref[2:3, :]
    b3 = vec_ref[3:4, :]
    b4 = vec_ref[4:5, :]

    # Layer 1: (TB,1) * (1,HP) outer-product broadcast on the VPU (K=1, keep
    # it off the MXU).
    h = jnp.maximum(x_ref[...] * w1 + b1, 0.0)                    # (TB, HP)

    # Layers 2 & 3: lane-dense 128x128 MXU matmuls, f32 accumulation.
    h = jnp.maximum(
        jnp.dot(h, mat_ref[0], preferred_element_type=jnp.float32) + b2, 0.0)
    h = jnp.maximum(
        jnp.dot(h, mat_ref[1], preferred_element_type=jnp.float32) + b3, 0.0)

    # Output layer: compute stays 128-wide for the MXU, then slice to the
    # n_sensitive real columns before sigmoid + store (narrow output block).
    logits = jnp.dot(h, mat_ref[2], preferred_element_type=jnp.float32) + b4
    out_ref[...] = jax.nn.sigmoid(logits[:, :ns]).astype(out_ref.dtype)


# --------------------------------------------------------------------------
# Wrapper
# --------------------------------------------------------------------------
def adversary_forward(x, packed_params, n_sensitive, block_b=1024):
    """x: (B, 1) f32. packed_params: (vec, mat) lane-padded slabs.
    Returns (B, n_sensitive)."""
    vec, mat = packed_params
    B = x.shape[0]

    # Tile selection:
    #  * large tiles (default up to block_b=1024) to amortize per-step overhead,
    #  * >=2 tiles once the batch is non-trivial (v7x: feed both TensorCores),
    #  * TB = round_up(cdiv(B, n_tiles), 8) so batch padding waste stays small.
    min_tiles = 2 if B >= 16 else 1
    n_tiles = max(min_tiles, pl.cdiv(B, block_b))
    TB = max(8, _round_up(pl.cdiv(B, n_tiles), 8))
    Bp = _round_up(B, TB)
    if Bp != B:
        x = jnp.pad(x, ((0, Bp - B), (0, 0)))
    grid = (Bp // TB,)

    # Resident (constant block index) weight slabs: fetched once, kept in
    # VMEM for all batch tiles. Single-buffer them when the API allows —
    # double-buffering a never-refetched block is pure VMEM/bookkeeping waste.
    resident_kwargs = {}
    if hasattr(pl, "Buffered"):
        resident_kwargs = dict(pipeline_mode=pl.Buffered(1))

    out = pl.pallas_call(
        adversary_kernel,
        out_shape=jax.ShapeDtypeStruct((Bp, n_sensitive), jnp.float32),
        grid=grid,
        in_specs=[
            # x: batch-tiled stream. (TB,1) lane-pads in VMEM but bytes are
            # tiny at these tile sizes; keeping it avoids an in-kernel
            # transpose of the layer-1 operand.
            pl.BlockSpec((TB, 1), lambda i: (i, 0)),
            pl.BlockSpec(vec.shape, lambda i: (0, 0), **resident_kwargs),
            pl.BlockSpec(mat.shape, lambda i: (0, 0, 0), **resident_kwargs),
        ],
        out_specs=pl.BlockSpec((TB, n_sensitive), lambda i: (i, 0)),
        compiler_params=pltpu.CompilerParams(
            dimension_semantics=("parallel",)),        # v7x: shard batch over 2 TCs
    )(x, vec, mat)

    # Only padded *rows* remain to trim (tiny copy); no column slice needed.
    return out[:B]


# --------------------------------------------------------------------------
# Params (torch-default-like init) + packing into lane-padded resident slabs
# --------------------------------------------------------------------------
def init_params(key, n_sensitive, n_hidden=32):
    ks = jax.random.split(key, 8)

    def lin(kw, kb, fan_in, fan_out):
        bound = 1.0 / jnp.sqrt(jnp.float32(fan_in))
        w = jax.random.uniform(kw, (fan_in, fan_out), jnp.float32, -bound, bound)
        b = jax.random.uniform(kb, (1, fan_out), jnp.float32, -bound, bound)
        return w, b

    w1, b1 = lin(ks[0], ks[1], 1, n_hidden)
    w2, b2 = lin(ks[2], ks[3], n_hidden, n_hidden)
    w3, b3 = lin(ks[4], ks[5], n_hidden, n_hidden)
    w4, b4 = lin(ks[6], ks[7], n_hidden, n_sensitive)
    return (w1, b1, w2, b2, w3, b3, w4, b4)


def pack_params(params, hp=LANE):
    """Zero-pad hidden dim to hp lanes and pack into two resident slabs:
    vec = [w1_row; b1; b2; b3; b4] (5, hp), mat = [w2; w3; w4] (3, hp, hp).
    Padded columns carry exact zeros (ReLU keeps them zero); the padded w4/b4
    columns are sliced away inside the kernel before the store."""
    w1, b1, w2, b2, w3, b3, w4, b4 = params

    def pad2(a, rows, cols):
        return jnp.pad(a, ((0, rows - a.shape[0]), (0, cols - a.shape[1])))

    vec = jnp.concatenate(
        [pad2(w1, 1, hp), pad2(b1, 1, hp), pad2(b2, 1, hp),
         pad2(b3, 1, hp), pad2(b4, 1, hp)], axis=0)                 # (5, hp)
    mat = jnp.stack(
        [pad2(w2, hp, hp), pad2(w3, hp, hp), pad2(w4, hp, hp)], axis=0)  # (3, hp, hp)
    return vec, mat


def reference_forward(x, params):
    (w1, b1, w2, b2, w3, b3, w4, b4) = params
    h = jnp.maximum(x @ w1 + b1, 0.0)
    h = jnp.maximum(h @ w2 + b2, 0.0)
    h = jnp.maximum(h @ w3 + b3, 0.0)
    return jax.nn.sigmoid(h @ w4 + b4)


# --------------------------------------------------------------------------
if __name__ == "__main__":
    key = jax.random.PRNGKey(0)
    k_param, k_x, k_x2 = jax.random.split(key, 3)

    n_hidden = 32
    n_sensitive = 4
    batch = 256

    params = init_params(k_param, n_sensitive, n_hidden)
    packed = pack_params(params)

    # Multi-tile grid (>=2 tiles; default block_b path).
    x = jax.random.normal(k_x, (batch, 1), jnp.float32)
    out = jax.block_until_ready(adversary_forward(x, packed, n_sensitive))
    ref = reference_forward(x, params)
    assert out.shape == (batch, n_sensitive)
    assert jnp.allclose(out, ref, atol=1e-4, rtol=1e-4)

    # Small block_b -> >2 tiles (exercises the multi-tile streaming path).
    out_small = jax.block_until_ready(
        adversary_forward(x, packed, n_sensitive, block_b=64))
    assert jnp.allclose(out_small, ref, atol=1e-4, rtol=1e-4)

    # Ragged batch (exercises row padding + the small-batch tile collapse).
    x2 = jax.random.normal(k_x2, (20, 1), jnp.float32)
    out2 = jax.block_until_ready(adversary_forward(x2, packed, n_sensitive))
    ref2 = reference_forward(x2, params)
    assert out2.shape == (20, n_sensitive)
    assert jnp.allclose(out2, ref2, atol=1e-4, rtol=1e-4)

    print("KERNEL_OK")
</pallas_src>

<mosaic_0001>
module attributes {stable_mosaic.version = 11 : i64} {
  func.func @adversary_kernel(%arg0: i32, %arg1: memref<128x1xf32, #tpu.memory_space<vmem>>, %arg2: memref<5x128xf32, #tpu.memory_space<vmem>>, %arg3: memref<3x128x128xf32, #tpu.memory_space<vmem>>, %arg4: memref<128x4xf32, #tpu.memory_space<vmem>>) attributes {dimension_semantics = [#tpu.dimension_semantics<parallel>], iteration_bounds = array<i64: 2>, scalar_prefetch = 0 : i64, scratch_operands = 0 : i64, tpu.core_type = #tpu.core_type<tc>, window_params = [{transform_indices = @transform_0, window_bounds = array<i64: 128, 1>}, {pipeline_mode = #tpu.pipeline_mode<synchronous>, transform_indices = @transform_1, window_bounds = array<i64: 5, 128>}, {pipeline_mode = #tpu.pipeline_mode<synchronous>, transform_indices = @transform_2, window_bounds = array<i64: 3, 128, 128>}, {transform_indices = @transform_3, window_bounds = array<i64: 128, 4>}]} {
    %c0 = arith.constant 0 : index
    %c0_0 = arith.constant 0 : index
    %0 = vector.load %arg2[%c0, %c0_0] : memref<5x128xf32, #tpu.memory_space<vmem>>, vector<1x128xf32>
    %c1 = arith.constant 1 : index
    %c0_1 = arith.constant 0 : index
    %1 = vector.load %arg2[%c1, %c0_1] : memref<5x128xf32, #tpu.memory_space<vmem>>, vector<1x128xf32>
    %c2 = arith.constant 2 : index
    %c0_2 = arith.constant 0 : index
    %2 = vector.load %arg2[%c2, %c0_2] : memref<5x128xf32, #tpu.memory_space<vmem>>, vector<1x128xf32>
    %c3 = arith.constant 3 : index
    %c0_3 = arith.constant 0 : index
    %3 = vector.load %arg2[%c3, %c0_3] : memref<5x128xf32, #tpu.memory_space<vmem>>, vector<1x128xf32>
    %c4 = arith.constant 4 : index
    %c0_4 = arith.constant 0 : index
    %4 = vector.load %arg2[%c4, %c0_4] : memref<5x128xf32, #tpu.memory_space<vmem>>, vector<1x128xf32>
    %c0_5 = arith.constant 0 : index
    %c0_6 = arith.constant 0 : index
    %5 = vector.load %arg1[%c0_5, %c0_6] : memref<128x1xf32, #tpu.memory_space<vmem>>, vector<128x1xf32>
    %6 = vector.broadcast %5 : vector<128x1xf32> to vector<128x128xf32>
    %7 = vector.broadcast %0 : vector<1x128xf32> to vector<128x128xf32>
    %8 = arith.mulf %6, %7 : vector<128x128xf32>
    %9 = vector.broadcast %1 : vector<1x128xf32> to vector<128x128xf32>
    %10 = arith.addf %8, %9 : vector<128x128xf32>
    %cst = arith.constant 0.000000e+00 : f32
    %11 = vector.broadcast %cst : f32 to vector<128x128xf32>
    %12 = arith.maximumf %10, %11 : vector<128x128xf32>
    %c0_7 = arith.constant 0 : index
    %c0_8 = arith.constant 0 : index
    %c0_9 = arith.constant 0 : index
    %13 = vector.load %arg3[%c0_7, %c0_8, %c0_9] : memref<3x128x128xf32, #tpu.memory_space<vmem>>, vector<1x128x128xf32>
    %14 = vector.shape_cast %13 : vector<1x128x128xf32> to vector<128x128xf32>
    %cst_10 = arith.constant dense<0.000000e+00> : vector<128x128xf32>
    %15 = tpu.matmul %12, %14, %cst_10 {dimension_numbers = #tpu.dot_dimension_numbers<[1], [0], [0], [1], [0, 0, 1, 1], [], []>} : vector<128x128xf32>, vector<128x128xf32>, vector<128x128xf32> -> vector<128x128xf32>
    %16 = vector.broadcast %2 : vector<1x128xf32> to vector<128x128xf32>
    %17 = arith.addf %15, %16 : vector<128x128xf32>
    %cst_11 = arith.constant 0.000000e+00 : f32
    %18 = vector.broadcast %cst_11 : f32 to vector<128x128xf32>
    %19 = arith.maximumf %17, %18 : vector<128x128xf32>
    %c1_12 = arith.constant 1 : index
    %c0_13 = arith.constant 0 : index
    %c0_14 = arith.constant 0 : index
    %20 = vector.load %arg3[%c1_12, %c0_13, %c0_14] : memref<3x128x128xf32, #tpu.memory_space<vmem>>, vector<1x128x128xf32>
    %21 = vector.shape_cast %20 : vector<1x128x128xf32> to vector<128x128xf32>
    %cst_15 = arith.constant dense<0.000000e+00> : vector<128x128xf32>
    %22 = tpu.matmul %19, %21, %cst_15 {dimension_numbers = #tpu.dot_dimension_numbers<[1], [0], [0], [1], [0, 0, 1, 1], [], []>} : vector<128x128xf32>, vector<128x128xf32>, vector<128x128xf32> -> vector<128x128xf32>
    %23 = vector.broadcast %3 : vector<1x128xf32> to vector<128x128xf32>
    %24 = arith.addf %22, %23 : vector<128x128xf32>
    %cst_16 = arith.constant 0.000000e+00 : f32
    %25 = vector.broadcast %cst_16 : f32 to vector<128x128xf32>
    %26 = arith.maximumf %24, %25 : vector<128x128xf32>
    %c2_17 = arith.constant 2 : index
    %c0_18 = arith.constant 0 : index
    %c0_19 = arith.constant 0 : index
    %27 = vector.load %arg3[%c2_17, %c0_18, %c0_19] : memref<3x128x128xf32, #tpu.memory_space<vmem>>, vector<1x128x128xf32>
    %28 = vector.shape_cast %27 : vector<1x128x128xf32> to vector<128x128xf32>
    %cst_20 = arith.constant dense<0.000000e+00> : vector<128x128xf32>
    %29 = tpu.matmul %26, %28, %cst_20 {dimension_numbers = #tpu.dot_dimension_numbers<[1], [0], [0], [1], [0, 0, 1, 1], [], []>} : vector<128x128xf32>, vector<128x128xf32>, vector<128x128xf32> -> vector<128x128xf32>
    %30 = vector.broadcast %4 : vector<1x128xf32> to vector<128x128xf32>
    %31 = arith.addf %29, %30 : vector<128x128xf32>
    %32 = vector.extract_strided_slice %31 {offsets = [0, 0], sizes = [128, 4], strides = [1, 1]} : vector<128x128xf32> to vector<128x4xf32>
    %33 = arith.negf %32 : vector<128x4xf32>
    %34 = math.exp %33 : vector<128x4xf32>
    %cst_21 = arith.constant 1.000000e+00 : f32
    %35 = vector.broadcast %cst_21 : f32 to vector<128x4xf32>
    %36 = arith.addf %35, %34 : vector<128x4xf32>
    %37 = arith.divf %35, %36 : vector<128x4xf32>
    %c0_22 = arith.constant 0 : index
    %c0_23 = arith.constant 0 : index
    %38 = vector.load %arg4[%c0_22, %c0_23] : memref<128x4xf32, #tpu.memory_space<vmem>>, vector<128x4xf32>
    tpu.vector_store %arg4[%c0_22, %c0_23], %37 {strides = array<i32>} : memref<128x4xf32, #tpu.memory_space<vmem>>, vector<128x4xf32>,
    return
  }
  func.func @transform_0(%arg0: i32) -> (i32, i32) {
    %c0_i32 = arith.constant 0 : i32
    %c0_i32_0 = arith.constant 0 : i32
    return %arg0, %c0_i32 : i32, i32
  }
  func.func @transform_1(%arg0: i32) -> (i32, i32) {
    %c0_i32 = arith.constant 0 : i32
    %c0_i32_0 = arith.constant 0 : i32
    %c0_i32_1 = arith.constant 0 : i32
    return %c0_i32, %c0_i32_0 : i32, i32
  }
  func.func @transform_2(%arg0: i32) -> (i32, i32, i32) {
    %c0_i32 = arith.constant 0 : i32
    %c0_i32_0 = arith.constant 0 : i32
    %c0_i32_1 = arith.constant 0 : i32
    %c0_i32_2 = arith.constant 0 : i32
    return %c0_i32, %c0_i32_0, %c0_i32_1 : i32, i32, i32
  }
  func.func @transform_3(%arg0: i32) -> (i32, i32) {
    %c0_i32 = arith.constant 0 : i32
    %c0_i32_0 = arith.constant 0 : i32
    return %arg0, %c0_i32 : i32, i32
  }
}

</mosaic_0001>

<bundles_post_ra>
// kernel: tpu_custom_call.1
= control target key start
LH: loop header
LB: loop body
LE: loop exit
PB: predicated region body
PF: predicated region fallthrough
CT: control target
= control target key end

     0   :  { %8 = vsyncpa [#allocation3], 0  ;;  %s1536_s12 = smov 0   ;;  %s1768_s0 = inlined_call_operand.vmem [shape: f32[256,1], index: 0, kind: input, shape index: {}]   ;;  %s1769_s1 = inlined_call_operand.vmem [shape: f32[5,128], index: 1, kind: input, shape index: {}]   ;;  %s1770_s2 = inlined_call_operand.hbm [shape: f32[3,128,128], index: 2, kind: input, shape index: {}]   ;;  %s1771_s3 = inlined_call_operand.vmem [shape: f32[256,4], index: 3, kind: output, shape index: {}]  }
   0x1 LB: > { %s1056_s13 = sadd.s32 4294967295, %s1510_s12   ;;  %p1058_p0 = scmp.ge.s32.totalorder %s1510_s12, 1  ;;  %s1510_s12 = sphi %s1536_s12, %s14_s12  }
   0x2   : > { %p113_p1 = scmp.lt.s32.totalorder %s1510_s12, 3  ;;  %s1512_s14 = smov [#allocation2]  }
   0x3   : > { %s128_s15 = sshll.u32 %s1512_s14, 4  ;;  %p1548_p3 = scmp.eq.s32.totalorder %s1056_s13, 0  ;;  %s129_s15 = int_to_ptr.vmem [resolvable:$true] %s128_s15 }
   0x4   : > { %p1544_p2 = pnand %p1058_p0, %p113_p1  ;;  %s1485_s18 = scalar_lea.vmem %s129_s15, 6144 }
   0x5   : > { %p1486_p7 = scmp.ne.s32.totalorder %s129_s15, %s1485_s18  ;;  %p1493_p10 = scmp.lt.s32.totalorder %s129_s15, %s129_s15 }
   0x6   : > { %p1390_p4 = pneg %p1544_p2  ;;  %p1494_p11 = scmp.lt.s32.totalorder %s1485_s18, %s1485_s18 }
   0x8   : > { %p1391_p5 = pnand %p1548_p3, %p1390_p4  ;;  %p1495_p12 = por %p1494_p11, %p1493_p10 }
   0xa   : > { %p1476_p6 = pneg %p1391_p5 }
   0xc   : > { %p1488_p8 = pnand %p1486_p7, %p1476_p6 }
   0xe   : > { %p1489_p9 = pneg %p1488_p8 }
  0x10   : > { %p1496_p13 = pnand %p1495_p12, %p1489_p9 }
  0x12   : > { %1499 = shalt.err (!%p1496_p13)
}
  0x13   : > { %s1513_s19 = smov 128   ;;  %s1514_s20 = smov 8  }
  0x14   : > { %1393 = dma.hbm_to_vmem [thread:$0]  (!%p1391_p5), %s1770_s2, 6144, %s129_s15, [#allocation3], %s1513_s19, %s1513_s19, %s1514_s20  }
  0x15   : > { %153 = sbr.rel (%p1544_p2) target bundleno = 827 (0x33b), region = 32 }
  0x1a   : > { %1505 = dma.done.wait (%p1548_p3), [#allocation3], 6144  }
  0x1b   : > { %1507 = vsyncadd (%p1548_p3), [#allocation3], 4294961152  ;;  %s1063_s23 = sshll.u32 %s1056_s13, 4  ;;  %v1515_v0 = vmov 0   ;;  %v361_v5 = vld [vmem:[#allocation2 + $0x78] sm:$0xff]  ;;  %v360_v6 = vld [vmem:[#allocation2 + $0x70] sm:$0xff] }
  0x1c   : > { %1409 = vset.pattern.permute.xlu1 %v1515_v0  ;;  %1408 = vset.pattern.permute.xlu0 %v1515_v0  ;;  %p178_p0 = scmp.lt.s32.totalorder %s1063_s23, 31  ;;  %v359_v9 = vld [vmem:[#allocation2 + $0x68] sm:$0xff]  ;;  %v358_v12 = vld [vmem:[#allocation2 + $0x60] sm:$0xff]  ;;  %v357_v13 = vld [vmem:[#allocation2 + $0x58] sm:$0xff]  ;;  %vm971_vm0 = vcmask 31744  }
  0x1d   : > { %1186 = vmatprep.subr.mxu0 %v361_v5  ;;  %v356_v16 = vld [vmem:[#allocation2 + $0x50] sm:$0xff]  ;;  %v355_v19 = vld [vmem:[#allocation2 + $0x48] sm:$0xff]  ;;  %v354_v20 = vld [vmem:[#allocation2 + $0x40] sm:$0xff] }
  0x1e   : > { %s1775_s23 = smov (!%p178_p0, %s1063_s23), 31  ;;  %1187 = vmatpush3.msra.mxu0 %v361_v5  ;;  %v353_v23 = vld [vmem:[#allocation2 + $0x38] sm:$0xff]  ;;  %v352_v26 = vld [vmem:[#allocation2 + $0x30] sm:$0xff]  ;;  %v351_v27 = vld [vmem:[#allocation2 + $0x28] sm:$0xff] }
  0x1f   : > { %s1064_s24 = sshll.u32 %s1775_s23, 3  ;;  %1188 = vmatprep.subr.mxu0 %v360_v6  ;;  %v350_v28 = vld [vmem:[#allocation2 + $0x20] sm:$0xff]  ;;  %v349_v29 = vld [vmem:[#allocation2 + $0x18] sm:$0xff]  ;;  %v348_v30 = vld [vmem:[#allocation2 + $0x10] sm:$0xff] }
  0x20   : > { %s1573_s27 = scalar_lea.vmem %s1768_s0, %s1064_s24  ;;  %1189 = vmatpush3.msra.mxu0 %v360_v6  ;;  %v543_v31 = vld [vmem:[#allocation2 + $0xf8] sm:$0xff]  ;;  %v542_v32 = vld [vmem:[#allocation2 + $0xf0] sm:$0xff]  ;;  %v347_v33 = vld [vmem:[#allocation2 + $0x8] sm:$0xff]  ;;  %s1731_s14 = scalar_lea.vmem %s1771_s3, %s1064_s24 }
  0x21   : > { %v196_v1 = vld [vmem:[%s1573_s27 + $0x10] sm:$0xff]  ;;  %v194_v2 = vld [vmem:[%s1573_s27] sm:$0xff]  ;;  %v197_v3 = vld [vmem:[%s1573_s27 + $0x18] sm:$0xff]  ;;  %1190 = vmatprep.subr.mxu0 %v359_v9  ;;  %1242 = vmatprep.subr.mxu1 %v543_v31 }
  0x22   : > { %222 = vperm.xlu1 %1409, %v196_v1   ;;  %212 = vperm.xlu0 %1408, %v194_v2   ;;  %v195_v4 = vld [vmem:[%s1573_s27 + $0x8] sm:$0xff]  ;;  %v198_v8 = vld [vmem:[%s1573_s27 + $0x20] sm:$0xff]  ;;  %v201_v10 = vld [vmem:[%s1573_s27 + $0x38] sm:$0xff] }
  0x23   : > { %v199_v7 = vld [vmem:[%s1573_s27 + $0x28] sm:$0xff]  ;;  %v200_v11 = vld [vmem:[%s1573_s27 + $0x30] sm:$0xff]  ;;  %1191 = vmatpush3.msra.mxu0 %v359_v9  ;;  %v202_v15 = vld [vmem:[%s1573_s27 + $0x40] sm:$0xff]  ;;  %1243 = vmatpush3.msra.mxu1 %v543_v31 }
  0x24   : > { %v203_v14 = vld [vmem:[%s1573_s27 + $0x48] sm:$0xff]  ;;  %1192 = vmatprep.subr.mxu0 %v358_v12  ;;  %v205_v17 = vld [vmem:[%s1573_s27 + $0x58] sm:$0xff]  ;;  %v204_v18 = vld [vmem:[%s1573_s27 + $0x50] sm:$0xff]  ;;  %1244 = vmatprep.subr.mxu1 %v542_v32 }
  0x25   : > { %1193 = vmatpush3.msra.mxu0 %v358_v12  ;;  %v207_v21 = vld [vmem:[%s1573_s27 + $0x68] sm:$0xff]  ;;  %v206_v22 = vld [vmem:[%s1573_s27 + $0x60] sm:$0xff]  ;;  %v209_v24 = vld [vmem:[%s1573_s27 + $0x78] sm:$0xff]  ;;  %1245 = vmatpush3.msra.mxu1 %v542_v32 }
  0x26   : > { %227 = vperm.xlu1 %1409, %v197_v3   ;;  %217 = vperm.xlu0 %1408, %v195_v4   ;;  %v208_v25 = vld [vmem:[%s1573_s27 + $0x70] sm:$0xff]  ;;  %v541_v34 = vld [vmem:[#allocation2 + $0xe8] sm:$0xff]  ;;  %v346_v35 = vld [vmem:[#allocation2] sm:$0xff] }
  0x27   : > { %1194 = vmatprep.subr.mxu0 %v357_v13  ;;  %v540_v36 = vld [vmem:[#allocation2 + $0xe0] sm:$0xff]  ;;  %1246 = vmatprep.subr.mxu1 %v541_v34  ;;  %v539_v37 = vld [vmem:[#allocation2 + $0xd8] sm:$0xff]  ;;  %v538_v38 = vld [vmem:[#allocation2 + $0xd0] sm:$0xff] }
  0x28   : > { %1195 = vmatpush3.msra.mxu0 %v357_v13  ;;  %1247 = vmatpush3.msra.mxu1 %v541_v34  ;;  %v537_v39 = vld [vmem:[#allocation2 + $0xc8] sm:$0xff]  ;;  %v536_v40 = vld [vmem:[#allocation2 + $0xc0] sm:$0xff]  ;;  %v535_v41 = vld [vmem:[#allocation2 + $0xb8] sm:$0xff] }
  0x29   : > { %1196 = vmatprep.subr.mxu0 %v356_v16  ;;  %1248 = vmatprep.subr.mxu1 %v540_v36  ;;  %v534_v42 = vld [vmem:[#allocation2 + $0xb0] sm:$0xff]  ;;  %v533_v43 = vld [vmem:[#allocation2 + $0xa8] sm:$0xff]  ;;  %v532_v44 = vld [vmem:[#allocation2 + $0xa0] sm:$0xff] }
  0x2a   : > { %237 = vperm.xlu1 %1409, %v199_v7   ;;  %232 = vperm.xlu0 %1408, %v198_v8   ;;  %v1594_v45 = vld [vmem:[%s1769_s1] ss:$0 sm:$0xff]  ;;  %v1599_v47 = vld [vmem:[%s1769_s1 + $0x1] ss:$0 sm:$0xff] }
  0x2b   : > { %1197 = vmatpush3.msra.mxu0 %v356_v16  ;;  %1249 = vmatpush3.msra.mxu1 %v540_v36 }
  0x2c   : > { %1198 = vmatprep.subr.mxu0 %v355_v19  ;;  %1250 = vmatprep.subr.mxu1 %v539_v37 }
  0x2d   : > { %1199 = vmatpush3.msra.mxu0 %v355_v19  ;;  %1251 = vmatpush3.msra.mxu1 %v539_v37 }
  0x2e   : > { %247 = vperm.xlu1 %1409, %v201_v10   ;;  %242 = vperm.xlu0 %1408, %v200_v11  }
  0x2f   : > { %1200 = vmatprep.subr.mxu0 %v354_v20  ;;  %1252 = vmatprep.subr.mxu1 %v538_v38 }
  0x30   : > { %1201 = vmatpush3.msra.mxu0 %v354_v20  ;;  %1253 = vmatpush3.msra.mxu1 %v538_v38 }
  0x31   : > { %1202 = vmatprep.subr.mxu0 %v353_v23  ;;  %1254 = vmatprep.subr.mxu1 %v537_v39 }
  0x32   : > { %257 = vperm.xlu1 %1409, %v203_v14   ;;  %252 = vperm.xlu0 %1408, %v202_v15  }
  0x33   : > { %1203 = vmatpush3.msra.mxu0 %v353_v23  ;;  %1255 = vmatpush3.msra.mxu1 %v537_v39 }
  0x34   : > { %1204 = vmatprep.subr.mxu0 %v352_v26  ;;  %1256 = vmatprep.subr.mxu1 %v536_v40 }
  0x35   : > { %1205 = vmatpush3.msra.mxu0 %v352_v26  ;;  %1257 = vmatpush3.msra.mxu1 %v536_v40 }
  0x36   : > { %267 = vperm.xlu1 %1409, %v205_v17   ;;  %262 = vperm.xlu0 %1408, %v204_v18  }
  0x37   : > { %1206 = vmatprep.subr.mxu0 %v351_v27  ;;  %1258 = vmatprep.subr.mxu1 %v535_v41 }
  0x38   : > { %1207 = vmatpush3.msra.mxu0 %v351_v27  ;;  %1259 = vmatpush3.msra.mxu1 %v535_v41 }
  0x39   : > { %1208 = vmatprep.subr.mxu0 %v350_v28  ;;  %1260 = vmatprep.subr.mxu1 %v534_v42 }
  0x3a   : > { %277 = vperm.xlu1 %1409, %v207_v21   ;;  %272 = vperm.xlu0 %1408, %v206_v22  }
  0x3b   : > { %1209 = vmatpush3.msra.mxu0 %v350_v28  ;;  %1261 = vmatpush3.msra.mxu1 %v534_v42 }
  0x3c   : > { %1210 = vmatprep.subr.mxu0 %v349_v29  ;;  %1262 = vmatprep.subr.mxu1 %v533_v43 }
  0x3d   : > { %1211 = vmatpush3.msra.mxu0 %v349_v29  ;;  %1263 = vmatpush3.msra.mxu1 %v533_v43 }
  0x3e   : > { %287 = vperm.xlu1 %1409, %v209_v24   ;;  %282 = vperm.xlu0 %1408, %v208_v25  }
  0x3f   : > { %1212 = vmatprep.subr.mxu0 %v348_v30  ;;  %1264 = vmatprep.subr.mxu1 %v532_v44 }
  0x40   : > { %1213 = vmatpush3.msra.mxu0 %v348_v30  ;;  %1265 = vmatpush3.msra.mxu1 %v532_v44 }
  0x41   : > { %1214 = vmatprep.subr.mxu0 %v347_v33 }
  0x42   : > { %1215 = vmatpush3.msra.mxu0 %v347_v33 }
  0x43   : > { %1216 = vmatprep.subr.mxu0 %v346_v35 }
  0x44   : > { %1217 = vmatpush3.msra.mxu0 %v346_v35 }
  0x9d   : > { %v223_v46 = vpop.permute.xlu1 %222  ;;  %v213_v48 = vpop.permute.xlu0 %212 }
  0x9e   : > { %v296_v49 = vmul.f32 %v1594_v45, %v223_v46  ;;  %v294_v50 = vmul.f32 %v1594_v45, %v213_v48 }
  0xa0   : > { %v314_v51 = vadd.f32 %v1599_v47, %v294_v50  ;;  %v316_v52 = vadd.f32 %v1599_v47, %v296_v49  ;;  %v531_v49 = vld [vmem:[#allocation2 + $0x98] sm:$0xff]  ;;  %v530_v50 = vld [vmem:[#allocation2 + $0x90] sm:$0xff] }
  0xa1   : > { %v228_v53 = vpop.permute.xlu1 %227  ;;  %v218_v54 = vpop.permute.xlu0 %217  ;;  %1266 = vmatprep.subr.mxu1 %v531_v49 }
  0xa2   : > { %v297_v55 = vmul.f32 %v1594_v45, %v228_v53  ;;  %v295_v56 = vmul.f32 %v1594_v45, %v218_v54  ;;  %v330_v57 = vmax.f32 %v314_v51, 0.0  ;;  %v332_v59 = vmax.f32 %v316_v52, 0.0  ;;  %1267 = vmatpush3.msra.mxu1 %v531_v49  ;;  %v529_v51 = vld [vmem:[#allocation2 + $0x88] sm:$0xff]  ;;  %v725_v52 = vld [vmem:[#allocation2 + $0x178] sm:$0xff]  ;;  %v724_v53 = vld [vmem:[#allocation2 + $0x170] sm:$0xff] }
  0xa3   : > { %1268 = vmatprep.subr.mxu1 %v530_v50  ;;  %1298 = vmatprep.subr.mxu0 %v725_v52  ;;  %v722_v54 = vld [vmem:[#allocation2 + $0x160] sm:$0xff] }
  0xa4   : > { %v315_v58 = vadd.f32 %v1599_v47, %v295_v56  ;;  %1218 = vmatprep.mubr.f32.mxu0 %v330_v57  ;;  %v317_v60 = vadd.f32 %v1599_v47, %v297_v55  ;;  %1269 = vmatpush3.msra.mxu1 %v530_v50  ;;  %v1633_v55 = vld [vmem:[#allocation2 + $0x158] sm:$0xff]  ;;  %v1635_v56 = vld [vmem:[#allocation2 + $0x150] sm:$0xff]  ;;  %v1639_v57 = vld [vmem:[#allocation2 + $0x148] sm:$0xff] }
  0xa5   : > { %v238_v61 = vpop.permute.xlu1 %237  ;;  %v233_v62 = vpop.permute.xlu0 %232  ;;  %1270 = vmatprep.subr.mxu1 %v529_v51  ;;  %v713_v50 = vld [vmem:[#allocation2 + $0x118] sm:$0xff] }
  0xa6   : > { %v331_v63 = vmax.f32 %v315_v58, 0.0  ;;  %v299_v0 = vmul.f32 %v1594_v45, %v238_v61  ;;  %v298_v1 = vmul.f32 %v1594_v45, %v233_v62  ;;  %v333_v3 = vmax.f32 %v317_v60, 0.0  ;;  %1271 = vmatpush3.msra.mxu1 %v529_v51  ;;  %v1643_v58 = vld [vmem:[#allocation2 + $0x140] sm:$0xff]  ;;  %v1651_v60 = vld [vmem:[#allocation2 + $0x130] sm:$0xff]  ;;  %v1655_v61 = vld [vmem:[#allocation2 + $0x128] sm:$0xff] }
  0xa7   : > { %v1659_v62 = vld [vmem:[#allocation2 + $0x120] sm:$0xff]  ;;  %v712_v51 = vld [vmem:[#allocation2 + $0x110] sm:$0xff] }
  0xa8   : > { %v318_v2 = vadd.f32 %v1599_v47, %v298_v1  ;;  %1219 = vmatmul.mubr.f32.vlgmr.msra.gmra.mxu0 %v331_v63  ;;  %v319_v6 = vadd.f32 %v1599_v47, %v299_v0  ;;  %v1668_v63 = vld [vmem:[%s1769_s1 + $0x2] ss:$0 sm:$0xff] }
  0xa9   : > { %v248_v4 = vpop.permute.xlu1 %247  ;;  %v243_v5 = vpop.permute.xlu0 %242  ;;  %1221 = vmatprep.mubr.f32.mxu0 %v332_v59  ;;  %1299 = vmatpush3.msra.mxu0 %v725_v52  ;;  %v1647_v59 = vld [vmem:[#allocation2 + $0x138] sm:$0xff] }
  0xaa   : > { %v334_v7 = vmax.f32 %v318_v2, 0.0  ;;  %v301_v8 = vmul.f32 %v1594_v45, %v248_v4  ;;  %v300_v9 = vmul.f32 %v1594_v45, %v243_v5  ;;  %v335_v14 = vmax.f32 %v319_v6, 0.0  ;;  %1300 = vmatprep.subr.mxu0 %v724_v53 }
  0xab   : > { %1301 = vmatpush3.msra.mxu0 %v724_v53 }
  0xac   : > { %v320_v10 = vadd.f32 %v1599_v47, %v300_v9  ;;  %1222 = vmatmul.mubr.f32.gmra.mxu0 %v333_v3  ;;  %v321_v11 = vadd.f32 %v1599_v47, %v301_v8 }
  0xad   : > { %v258_v12 = vpop.permute.xlu1 %257  ;;  %v253_v13 = vpop.permute.xlu0 %252  ;;  %1224 = vmatprep.mubr.f32.mxu0 %v334_v7 }
  0xae   : > { %v336_v15 = vmax.f32 %v320_v10, 0.0  ;;  %v303_v16 = vmul.f32 %v1594_v45, %v258_v12  ;;  %v302_v17 = vmul.f32 %v1594_v45, %v253_v13  ;;  %v337_v19 = vmax.f32 %v321_v11, 0.0 }
  0xb0   : > { %v322_v18 = vadd.f32 %v1599_v47, %v302_v17  ;;  %1225 = vmatmul.mubr.f32.gmra.mxu0 %v335_v14  ;;  %v323_v22 = vadd.f32 %v1599_v47, %v303_v16 }
  0xb1   : > { %v268_v20 = vpop.permute.xlu1 %267  ;;  %v263_v21 = vpop.permute.xlu0 %262  ;;  %1227 = vmatprep.mubr.f32.mxu0 %v336_v15 }
  0xb2   : > { %v338_v23 = vmax.f32 %v322_v18, 0.0  ;;  %v305_v24 = vmul.f32 %v1594_v45, %v268_v20  ;;  %v304_v25 = vmul.f32 %v1594_v45, %v263_v21  ;;  %v339_v30 = vmax.f32 %v323_v22, 0.0 }
  0xb4   : > { %v324_v26 = vadd.f32 %v1599_v47, %v304_v25  ;;  %1228 = vmatmul.mubr.f32.gmra.mxu0 %v337_v19  ;;  %v325_v27 = vadd.f32 %v1599_v47, %v305_v24 }
  0xb5   : > { %v278_v28 = vpop.permute.xlu1 %277  ;;  %v273_v29 = vpop.permute.xlu0 %272  ;;  %1230 = vmatprep.mubr.f32.mxu0 %v338_v23 }
  0xb6   : > { %v340_v31 = vmax.f32 %v324_v26, 0.0  ;;  %v307_v32 = vmul.f32 %v1594_v45, %v278_v28  ;;  %v306_v33 = vmul.f32 %v1594_v45, %v273_v29  ;;  %v341_v35 = vmax.f32 %v325_v27, 0.0 }
  0xb8   : > { %v326_v34 = vadd.f32 %v1599_v47, %v306_v33  ;;  %1231 = vmatmul.mubr.f32.gmra.mxu0 %v339_v30  ;;  %v327_v38 = vadd.f32 %v1599_v47, %v307_v32 }
  0xb9   : > { %v288_v36 = vpop.permute.xlu1 %287  ;;  %v283_v37 = vpop.permute.xlu0 %282  ;;  %1233 = vmatprep.mubr.f32.mxu0 %v340_v31 }
  0xba   : > { %v342_v39 = vmax.f32 %v326_v34, 0.0  ;;  %v309_v40 = vmul.f32 %v1594_v45, %v288_v36  ;;  %v308_v41 = vmul.f32 %v1594_v45, %v283_v37  ;;  %v343_v43 = vmax.f32 %v327_v38, 0.0  ;;  %v528_v45 = vld [vmem:[#allocation2 + $0x80] sm:$0xff] }
  0xbb   : > { %1272 = vmatprep.subr.mxu1 %v528_v45 }
  0xbc   : > { %v328_v42 = vadd.f32 %v1599_v47, %v308_v41  ;;  %1234 = vmatmul.mubr.f32.gmra.mxu0 %v341_v35  ;;  %v329_v44 = vadd.f32 %v1599_v47, %v309_v40  ;;  %1273 = vmatpush3.msra.mxu1 %v528_v45  ;;  %v723_v47 = vld [vmem:[#allocation2 + $0x168] sm:$0xff] }
  0xbd   : > { %1236 = vmatprep.mubr.f32.mxu0 %v342_v39  ;;  %1354 = vmatprep.subr.mxu1 %v725_v52  ;;  %v711_v45 = vld [vmem:[#allocation2 + $0x108] sm:$0xff] }
  0xbe   : > { %v344_v46 = vmax.f32 %v328_v42, 0.0  ;;  %v345_v48 = vmax.f32 %v329_v44, 0.0  ;;  %1302 = vmatprep.subr.mxu0 %v723_v47 }
  0xbf   : > { %1303 = vmatpush3.msra.mxu0 %v723_v47 }
  0xc0   : > { %1237 = vmatmul.mubr.f32.gmra.mxu0 %v343_v43  ;;  %1304 = vmatprep.subr.mxu0 %v722_v54 }
  0xc1   : > { %1239 = vmatprep.mubr.f32.mxu0 %v344_v46  ;;  %1305 = vmatpush3.msra.mxu0 %v722_v54 }
  0xc2   : > { %1306 = vmatprep.subr.mxu0 %v1633_v55 }
  0xc3   : > { %1307 = vmatpush3.msra.mxu0 %v1633_v55 }
  0xc4   : > { %1240 = vmatmul.mubr.f32.gmra.mxu0 %v345_v48  ;;  %1308 = vmatprep.subr.mxu0 %v1635_v56 }
  0xc5   : > { %1309 = vmatpush3.msra.mxu0 %v1635_v56 }
  0xc6   : > { %1310 = vmatprep.subr.mxu0 %v1639_v57 }
  0xc7   : > { %1311 = vmatpush3.msra.mxu0 %v1639_v57 }
  0xc8   : > { %1312 = vmatprep.subr.mxu0 %v1643_v58 }
  0xc9   : > { %1313 = vmatpush3.msra.mxu0 %v1643_v58 }
  0xca   : > { %1314 = vmatprep.subr.mxu0 %v1647_v59 }
  0xcb   : > { %1315 = vmatpush3.msra.mxu0 %v1647_v59 }
  0xcc   : > { %1316 = vmatprep.subr.mxu0 %v1651_v60 }
  0xcd   : > { %1317 = vmatpush3.msra.mxu0 %v1651_v60 }
  0xce   : > { %1318 = vmatprep.subr.mxu0 %v1655_v61 }
  0xcf   : > { %1319 = vmatpush3.msra.mxu0 %v1655_v61 }
  0xd0   : > { %1320 = vmatprep.subr.mxu0 %v1659_v62 }
  0xd1   : > { %1321 = vmatpush3.msra.mxu0 %v1659_v62 }
  0xd2   : > { %1322 = vmatprep.subr.mxu0 %v713_v50 }
  0xd3   : > { %1323 = vmatpush3.msra.mxu0 %v713_v50 }
  0xd4   : > { %1324 = vmatprep.subr.mxu0 %v712_v51 }
  0xd5   : > { %1325 = vmatpush3.msra.mxu0 %v712_v51 }
  0xd6   : > { %1326 = vmatprep.subr.mxu0 %v711_v45 }
  0xd7   : > { %1327 = vmatpush3.msra.mxu0 %v711_v45 }
 0x168   : > { %v1220_v0 = vpop.f32.mrf.mxu0 }
 0x169   : > { %v438_v1 = vadd.f32 %v1220_v0, %v1668_v63 }
 0x16a   : > { %v432_v2 = vpop.f32.mrf.mxu0 }
 0x16b   : > { %v433_v3 = vadd.f32 %v1668_v63, %v432_v2  ;;  %v512_v6 = vmax.f32 %v438_v1, 0.0 }
 0x16c   : > { %v1223_v4 = vpop.f32.mrf.mxu0 }
 0x16d   : > { %v511_v5 = vmax.f32 %v433_v3, 0.0  ;;  %v448_v7 = vadd.f32 %v1223_v4, %v1668_v63 }
 0x16e   : > { %v442_v8 = vpop.f32.mrf.mxu0 }
 0x16f   : > { %v443_v9 = vadd.f32 %v1668_v63, %v442_v8  ;;  %1274 = vmatprep.mubr.f32.mxu1 %v511_v5  ;;  %v514_v12 = vmax.f32 %v448_v7, 0.0 }
 0x170   : > { %v1226_v10 = vpop.f32.mrf.mxu0  ;;  %1275 = vmatmul.mubr.f32.vlgmr.msra.gmra.mxu1 %v512_v6 }
 0x171   : > { %v513_v11 = vmax.f32 %v443_v9, 0.0  ;;  %1370 = vmatpush3.msra.mxu1 %v725_v52  ;;  %v458_v13 = vadd.f32 %v1226_v10, %v1668_v63  ;;  %v710_v52 = vld [vmem:[#allocation2 + $0x100] sm:$0xff] }
 0x172   : > { %v452_v14 = vpop.f32.mrf.mxu0  ;;  %1355 = vmatprep.subr.mxu1 %v724_v53  ;;  %1328 = vmatprep.subr.mxu0 %v710_v52 }
 0x173   : > { %v453_v15 = vadd.f32 %v1668_v63, %v452_v14  ;;  %1277 = vmatprep.mubr.f32.mxu1 %v513_v11  ;;  %1371 = vmatpush3.msra.mxu1 %v724_v53  ;;  %v516_v18 = vmax.f32 %v458_v13, 0.0  ;;  %v1070_v53 = vld [vmem:[%s1769_s1 + $0x3] ss:$0 sm:$0xff] }
 0x174   : > { %v1229_v16 = vpop.f32.mrf.mxu0  ;;  %1278 = vmatmul.mubr.f32.gmra.mxu1 %v514_v12  ;;  %1356 = vmatprep.subr.mxu1 %v723_v47 }
 0x175   : > { %v515_v17 = vmax.f32 %v453_v15, 0.0  ;;  %1372 = vmatpush3.msra.mxu1 %v723_v47  ;;  %v468_v19 = vadd.f32 %v1229_v16, %v1668_v63  ;;  %1329 = vmatpush3.msra.mxu0 %v710_v52 }
 0x176   : > { %v462_v20 = vpop.f32.mrf.mxu0  ;;  %1357 = vmatprep.subr.mxu1 %v722_v54 }
 0x177   : > { %v463_v21 = vadd.f32 %v1668_v63, %v462_v20  ;;  %1280 = vmatprep.mubr.f32.mxu1 %v515_v17  ;;  %1373 = vmatpush3.msra.mxu1 %v722_v54  ;;  %v518_v24 = vmax.f32 %v468_v19, 0.0 }
 0x178   : > { %v1232_v22 = vpop.f32.mrf.mxu0  ;;  %1281 = vmatmul.mubr.f32.gmra.mxu1 %v516_v18  ;;  %1358 = vmatprep.subr.mxu1 %v1633_v55 }
 0x179   : > { %v517_v23 = vmax.f32 %v463_v21, 0.0  ;;  %1374 = vmatpush3.msra.mxu1 %v1633_v55  ;;  %v478_v25 = vadd.f32 %v1232_v22, %v1668_v63 }
 0x17a   : > { %v472_v26 = vpop.f32.mrf.mxu0  ;;  %1359 = vmatprep.subr.mxu1 %v1635_v56 }
 0x17b   : > { %v473_v27 = vadd.f32 %v1668_v63, %v472_v26  ;;  %1283 = vmatprep.mubr.f32.mxu1 %v517_v23  ;;  %1375 = vmatpush3.msra.mxu1 %v1635_v56  ;;  %v520_v30 = vmax.f32 %v478_v25, 0.0 }
 0x17c   : > { %v1235_v28 = vpop.f32.mrf.mxu0  ;;  %1284 = vmatmul.mubr.f32.gmra.mxu1 %v518_v24  ;;  %1360 = vmatprep.subr.mxu1 %v1639_v57 }
 0x17d   : > { %v519_v29 = vmax.f32 %v473_v27, 0.0  ;;  %1376 = vmatpush3.msra.mxu1 %v1639_v57  ;;  %v488_v31 = vadd.f32 %v1235_v28, %v1668_v63 }
 0x17e   : > { %v482_v32 = vpop.f32.mrf.mxu0  ;;  %1361 = vmatprep.subr.mxu1 %v1643_v58 }
 0x17f   : > { %v483_v33 = vadd.f32 %v1668_v63, %v482_v32  ;;  %1286 = vmatprep.mubr.f32.mxu1 %v519_v29  ;;  %1377 = vmatpush3.msra.mxu1 %v1643_v58  ;;  %v522_v36 = vmax.f32 %v488_v31, 0.0 }
 0x180   : > { %v1238_v34 = vpop.f32.mrf.mxu0  ;;  %1287 = vmatmul.mubr.f32.gmra.mxu1 %v520_v30  ;;  %1362 = vmatprep.subr.mxu1 %v1647_v59 }
 0x181   : > { %v521_v35 = vmax.f32 %v483_v33, 0.0  ;;  %1378 = vmatpush3.msra.mxu1 %v1647_v59  ;;  %v498_v37 = vadd.f32 %v1238_v34, %v1668_v63 }
 0x182   : > { %v492_v38 = vpop.f32.mrf.mxu0  ;;  %1363 = vmatprep.subr.mxu1 %v1651_v60 }
 0x183   : > { %v493_v39 = vadd.f32 %v1668_v63, %v492_v38  ;;  %1289 = vmatprep.mubr.f32.mxu1 %v521_v35  ;;  %1379 = vmatpush3.msra.mxu1 %v1651_v60  ;;  %v524_v42 = vmax.f32 %v498_v37, 0.0  ;;  %v1708_v37 = vld [vmem:[%s1769_s1 + $0x4] ss:$0 sm:$0xff] }
 0x184   : > { %v1241_v40 = vpop.f32.mrf.mxu0  ;;  %1290 = vmatmul.mubr.f32.gmra.mxu1 %v522_v36  ;;  %1364 = vmatprep.subr.mxu1 %v1655_v61 }
 0x185   : > { %v523_v41 = vmax.f32 %v493_v39, 0.0  ;;  %1380 = vmatpush3.msra.mxu1 %v1655_v61  ;;  %v508_v43 = vadd.f32 %v1241_v40, %v1668_v63 }
 0x186   : > { %v502_v44 = vpop.f32.mrf.mxu0  ;;  %1365 = vmatprep.subr.mxu1 %v1659_v62 }
 0x187   : > { %v503_v46 = vadd.f32 %v1668_v63, %v502_v44  ;;  %1292 = vmatprep.mubr.f32.mxu1 %v523_v41  ;;  %1381 = vmatpush3.msra.mxu1 %v1659_v62  ;;  %v526_v49 = vmax.f32 %v508_v43, 0.0 }
 0x188   : > { %1293 = vmatmul.mubr.f32.gmra.mxu1 %v524_v42  ;;  %1366 = vmatprep.subr.mxu1 %v713_v50 }
 0x189   : > { %v525_v48 = vmax.f32 %v503_v46, 0.0  ;;  %1382 = vmatpush3.msra.mxu1 %v713_v50 }
 0x18a   : > { %1367 = vmatprep.subr.mxu1 %v712_v51 }
 0x18b   : > { %1295 = vmatprep.mubr.f32.mxu1 %v525_v48  ;;  %1383 = vmatpush3.msra.mxu1 %v712_v51 }
 0x18c   : > { %1296 = vmatmul.mubr.f32.gmra.mxu1 %v526_v49  ;;  %1368 = vmatprep.subr.mxu1 %v711_v45 }
 0x18d   : > { %1384 = vmatpush3.msra.mxu1 %v711_v45 }
 0x18e   : > { %1369 = vmatprep.subr.mxu1 %v710_v52 }
 0x18f   : > { %1385 = vmatpush3.msra.mxu1 %v710_v52 }
 0x230   : > { %v1276_v47 = vpop.f32.mrf.mxu1 }
 0x231   : > { %v620_v54 = vadd.f32 %v1276_v47, %v1070_v53 }
 0x232   : > { %v614_v55 = vpop.f32.mrf.mxu1 }
 0x233   : > { %v615_v56 = vadd.f32 %v1070_v53, %v614_v55  ;;  %v694_v59 = vmax.f32 %v620_v54, 0.0 }
 0x234   : > { %v1279_v57 = vpop.f32.mrf.mxu1 }
 0x235   : > { %v693_v58 = vmax.f32 %v615_v56, 0.0  ;;  %v630_v60 = vadd.f32 %v1279_v57, %v1070_v53 }
 0x236   : > { %v624_v61 = vpop.f32.mrf.mxu1 }
 0x237   : > { %v625_v62 = vadd.f32 %v1070_v53, %v624_v61  ;;  %1330 = vmatprep.mubr.f32.mxu0 %v693_v58  ;;  %v696_v1 = vmax.f32 %v630_v60, 0.0 }
 0x238   : > { %v1282_v63 = vpop.f32.mrf.mxu1  ;;  %1331 = vmatmul.mubr.f32.vlgmr.msra.gmra.mxu0 %v694_v59 }
 0x239   : > { %v695_v0 = vmax.f32 %v625_v62, 0.0  ;;  %v640_v2 = vadd.f32 %v1282_v63, %v1070_v53 }
 0x23a   : > { %v634_v3 = vpop.f32.mrf.mxu1 }
 0x23b   : > { %v635_v4 = vadd.f32 %v1070_v53, %v634_v3  ;;  %1333 = vmatprep.mubr.f32.mxu0 %v695_v0  ;;  %v698_v7 = vmax.f32 %v640_v2, 0.0 }
 0x23c   : > { %v1285_v5 = vpop.f32.mrf.mxu1  ;;  %1334 = vmatmul.mubr.f32.gmra.mxu0 %v696_v1 }
 0x23d   : > { %v697_v6 = vmax.f32 %v635_v4, 0.0  ;;  %v650_v8 = vadd.f32 %v1285_v5, %v1070_v53 }
 0x23e   : > { %v644_v9 = vpop.f32.mrf.mxu1 }
 0x23f   : > { %v645_v10 = vadd.f32 %v1070_v53, %v644_v9  ;;  %1336 = vmatprep.mubr.f32.mxu0 %v697_v6  ;;  %v700_v13 = vmax.f32 %v650_v8, 0.0 }
 0x240   : > { %v1288_v11 = vpop.f32.mrf.mxu1  ;;  %1337 = vmatmul.mubr.f32.gmra.mxu0 %v698_v7 }
 0x241   : > { %v699_v12 = vmax.f32 %v645_v10, 0.0  ;;  %v660_v14 = vadd.f32 %v1288_v11, %v1070_v53 }
 0x242   : > { %v654_v15 = vpop.f32.mrf.mxu1 }
 0x243   : > { %v655_v16 = vadd.f32 %v1070_v53, %v654_v15  ;;  %1339 = vmatprep.mubr.f32.mxu0 %v699_v12  ;;  %v702_v19 = vmax.f32 %v660_v14, 0.0 }
 0x244   : > { %v1291_v17 = vpop.f32.mrf.mxu1  ;;  %1340 = vmatmul.mubr.f32.gmra.mxu0 %v700_v13 }
 0x245   : > { %v701_v18 = vmax.f32 %v655_v16, 0.0  ;;  %v670_v20 = vadd.f32 %v1291_v17, %v1070_v53 }
 0x246   : > { %v664_v21 = vpop.f32.mrf.mxu1 }
 0x247   : > { %v665_v22 = vadd.f32 %v1070_v53, %v664_v21  ;;  %1342 = vmatprep.mubr.f32.mxu1 %v701_v18  ;;  %v704_v25 = vmax.f32 %v670_v20, 0.0 }
 0x248   : > { %v1294_v23 = vpop.f32.mrf.mxu1  ;;  %1343 = vmatmul.mubr.f32.vlgmr.msra.gmra.mxu1 %v702_v19 }
 0x249   : > { %v703_v24 = vmax.f32 %v665_v22, 0.0  ;;  %v680_v26 = vadd.f32 %v1294_v23, %v1070_v53 }
 0x24a   : > { %v674_v27 = vpop.f32.mrf.mxu1 }
 0x24b   : > { %v675_v28 = vadd.f32 %v1070_v53, %v674_v27  ;;  %1345 = vmatprep.mubr.f32.mxu1 %v703_v24  ;;  %v706_v31 = vmax.f32 %v680_v26, 0.0 }
 0x24c   : > { %v1297_v29 = vpop.f32.mrf.mxu1  ;;  %1346 = vmatmul.mubr.f32.gmra.mxu1 %v704_v25 }
 0x24d   : > { %v705_v30 = vmax.f32 %v675_v28, 0.0  ;;  %v690_v32 = vadd.f32 %v1297_v29, %v1070_v53 }
 0x24e   : > { %v684_v33 = vpop.f32.mrf.mxu1 }
 0x24f   : > { %v685_v34 = vadd.f32 %v1070_v53, %v684_v33  ;;  %1348 = vmatprep.mubr.f32.mxu1 %v705_v30  ;;  %v708_v36 = vmax.f32 %v690_v32, 0.0 }
 0x250   : > { %1349 = vmatmul.mubr.f32.gmra.mxu1 %v706_v31 }
 0x251   : > { %v707_v35 = vmax.f32 %v685_v34, 0.0 }
 0x253   : > { %1351 = vmatprep.mubr.f32.mxu1 %v707_v35 }
 0x254   : > { %1352 = vmatmul.mubr.f32.gmra.mxu1 %v708_v36 }
 0x2f8   : > { %v1332_v38 = vpop.f32.mrf.mxu0 }
 0x2f9   : > { %v802_v39 = vadd.f32 %v1332_v38, %v1708_v37 }
 0x2fa   : > { %v796_v40 = vpop.f32.mrf.mxu0 }
 0x2fb   : > { %v1073_v41 = vmul.f32 -1.442695, %v802_v39  ;;  %v797_v42 = vadd.f32 %v1708_v37, %v796_v40 }
 0x2fc   : > { %v1335_v43 = vpop.f32.mrf.mxu0 }
 0x2fd   : > { %1410 = vpow2.f32 %v1073_v41  ;;  %v1072_v44 = vmul.f32 -1.442695, %v797_v42  ;;  %v812_v46 = vadd.f32 %v1335_v43, %v1708_v37 }
 0x2fe   : > { %v806_v48 = vpop.f32.mrf.mxu0 }
 0x2ff   : > { %1412 = vpow2.f32 %v1072_v44  ;;  %v1075_v49 = vmul.f32 -1.442695, %v812_v46  ;;  %v807_v50 = vadd.f32 %v1708_v37, %v806_v48 }
 0x300   : > { %v1338_v51 = vpop.f32.mrf.mxu0 }
 0x301   : > { %1414 = vpow2.f32 %v1075_v49  ;;  %v1074_v45 = vmul.f32 -1.442695, %v807_v50  ;;  %v822_v52 = vadd.f32 %v1338_v51, %v1708_v37 }
 0x302   : > { %v816_v53 = vpop.f32.mrf.mxu0 }
 0x303   : > { %1416 = vpow2.f32 %v1074_v45  ;;  %v1077_v47 = vmul.f32 -1.442695, %v822_v52  ;;  %v817_v54 = vadd.f32 %v1708_v37, %v816_v53 }
 0x304   : > { %v1341_v55 = vpop.f32.mrf.mxu0 }
 0x305   : > { %1418 = vpow2.f32 %v1077_v47  ;;  %v1076_v56 = vmul.f32 -1.442695, %v817_v54  ;;  %v832_v57 = vadd.f32 %v1341_v55, %v1708_v37 }
 0x306   : > { %v826_v58 = vpop.f32.mrf.mxu0 }
 0x307   : > { %1420 = vpow2.f32 %v1076_v56  ;;  %v1079_v59 = vmul.f32 -1.442695, %v832_v57  ;;  %v827_v60 = vadd.f32 %v1708_v37, %v826_v58 }
 0x308   : > { %v1344_v61 = vpop.f32.mrf.mxu1 }
 0x309   : > { %1422 = vpow2.f32 %v1079_v59  ;;  %v1078_v62 = vmul.f32 -1.442695, %v827_v60  ;;  %v842_v63 = vadd.f32 %v1344_v61, %v1708_v37 }
 0x30a   : > { %v1411_v0 = vpop.eup %1410  ;;  %v836_v1 = vpop.f32.mrf.mxu1 }
 0x30b   : > { %v924_v2 = vadd.f32 1.0, %v1411_v0  ;;  %1424 = vpow2.f32 %v1078_v62  ;;  %v1081_v3 = vmul.f32 -1.442695, %v842_v63  ;;  %v837_v4 = vadd.f32 %v1708_v37, %v836_v1 }
 0x30c   : > { %v1413_v5 = vpop.eup %1412  ;;  %v1347_v6 = vpop.f32.mrf.mxu1 }
 0x30d   : > { %1426 = vrcp.f32 %v924_v2  ;;  %v923_v7 = vadd.f32 1.0, %v1413_v5  ;;  %v1080_v8 = vmul.f32 -1.442695, %v837_v4  ;;  %v852_v9 = vadd.f32 %v1347_v6, %v1708_v37 }
 0x30e   : > { %v1415_v10 = vpop.eup %1414  ;;  %1428 = vpow2.f32 %v1081_v3  ;;  %v846_v11 = vpop.f32.mrf.mxu1 }
 0x30f   : > { %1430 = vrcp.f32 %v923_v7  ;;  %v926_v12 = vadd.f32 1.0, %v1415_v10  ;;  %v1083_v13 = vmul.f32 -1.442695, %v852_v9  ;;  %v847_v14 = vadd.f32 %v1708_v37, %v846_v11 }
 0x310   : > { %v1417_v15 = vpop.eup %1416  ;;  %1432 = vpow2.f32 %v1080_v8  ;;  %v1350_v16 = vpop.f32.mrf.mxu1 }
 0x311   : > { %1434 = vrcp.f32 %v926_v12  ;;  %v925_v17 = vadd.f32 1.0, %v1417_v15  ;;  %v1082_v18 = vmul.f32 -1.442695, %v847_v14  ;;  %v862_v19 = vadd.f32 %v1350_v16, %v1708_v37 }
 0x312   : > { %v1419_v20 = vpop.eup %1418  ;;  %1436 = vpow2.f32 %v1083_v13  ;;  %v856_v21 = vpop.f32.mrf.mxu1 }
 0x313   : > { %1438 = vrcp.f32 %v925_v17  ;;  %v928_v22 = vadd.f32 1.0, %v1419_v20  ;;  %v1085_v23 = vmul.f32 -1.442695, %v862_v19  ;;  %v857_v24 = vadd.f32 %v1708_v37, %v856_v21 }
 0x314   : > { %v1421_v25 = vpop.eup %1420  ;;  %1440 = vpow2.f32 %v1082_v18  ;;  %v1353_v26 = vpop.f32.mrf.mxu1 }
 0x315   : > { %1442 = vrcp.f32 %v928_v22  ;;  %v927_v27 = vadd.f32 1.0, %v1421_v25  ;;  %v1084_v28 = vmul.f32 -1.442695, %v857_v24  ;;  %v872_v29 = vadd.f32 %v1353_v26, %v1708_v37 }
 0x316   : > { %v1423_v30 = vpop.eup %1422  ;;  %1444 = vpow2.f32 %v1085_v23  ;;  %v866_v31 = vpop.f32.mrf.mxu1 }
 0x317   : > { %1446 = vrcp.f32 %v927_v27  ;;  %v930_v32 = vadd.f32 1.0, %v1423_v30  ;;  %v1087_v33 = vmul.f32 -1.442695, %v872_v29  ;;  %v867_v34 = vadd.f32 %v1708_v37, %v866_v31 }
 0x318   : > { %v1425_v35 = vpop.eup %1424  ;;  %1448 = vpow2.f32 %v1084_v28 }
 0x319   : > { %1450 = vrcp.f32 %v930_v32  ;;  %v929_v36 = vadd.f32 1.0, %v1425_v35  ;;  %v1086_v38 = vmul.f32 -1.442695, %v867_v34 }
 0x31a   : > { %v1427_v39 = vpop.eup %1426  ;;  %1452 = vpow2.f32 %v1087_v33 }
 0x31b   : > { %v1429_v40 = vpop.eup %1428  ;;  %973 = vst.msk [vmem:[%s1731_s14 + $0x8] sm:$0xff] %vm971_vm0, %v1427_v39  ;;  %1454 = vrcp.f32 %v929_v36 }
 0x31c   : > { %v1431_v37 = vpop.eup %1430  ;;  %v932_v41 = vadd.f32 1.0, %v1429_v40  ;;  %1456 = vpow2.f32 %v1086_v38 }
 0x31d   : > { %v1433_v42 = vpop.eup %1432  ;;  %972 = vst.msk [vmem:[%s1731_s14] sm:$0xff] %vm971_vm0, %v1431_v37 }
 0x31e   : > { %v1435_v43 = vpop.eup %1434  ;;  %1458 = vrcp.f32 %v932_v41  ;;  %v931_v44 = vadd.f32 1.0, %v1433_v42 }
 0x31f   : > { %v1437_v46 = vpop.eup %1436  ;;  %975 = vst.msk [vmem:[%s1731_s14 + $0x18] sm:$0xff] %vm971_vm0, %v1435_v43 }
 0x320   : > { %v1439_v48 = vpop.eup %1438  ;;  %1460 = vrcp.f32 %v931_v44  ;;  %v934_v49 = vadd.f32 1.0, %v1437_v46 }
 0x321   : > { %v1441_v50 = vpop.eup %1440  ;;  %974 = vst.msk [vmem:[%s1731_s14 + $0x10] sm:$0xff] %vm971_vm0, %v1439_v48 }
 0x322   : > { %v1443_v51 = vpop.eup %1442  ;;  %1462 = vrcp.f32 %v934_v49  ;;  %v933_v45 = vadd.f32 1.0, %v1441_v50 }
 0x323   : > { %v1445_v52 = vpop.eup %1444  ;;  %977 = vst.msk [vmem:[%s1731_s14 + $0x28] sm:$0xff] %vm971_vm0, %v1443_v51 }
 0x324   : > { %v1447_v53 = vpop.eup %1446  ;;  %1464 = vrcp.f32 %v933_v45  ;;  %v936_v47 = vadd.f32 1.0, %v1445_v52 }
 0x325   : > { %v1449_v54 = vpop.eup %1448  ;;  %976 = vst.msk [vmem:[%s1731_s14 + $0x20] sm:$0xff] %vm971_vm0, %v1447_v53 }
 0x326   : > { %v1451_v55 = vpop.eup %1450  ;;  %1466 = vrcp.f32 %v936_v47  ;;  %v935_v56 = vadd.f32 1.0, %v1449_v54 }
 0x327   : > { %v1453_v57 = vpop.eup %1452  ;;  %979 = vst.msk [vmem:[%s1731_s14 + $0x38] sm:$0xff] %vm971_vm0, %v1451_v55 }
 0x328   : > { %v1455_v58 = vpop.eup %1454  ;;  %1468 = vrcp.f32 %v935_v56  ;;  %v938_v59 = vadd.f32 1.0, %v1453_v57 }
 0x329   : > { %v1457_v60 = vpop.eup %1456  ;;  %978 = vst.msk [vmem:[%s1731_s14 + $0x30] sm:$0xff] %vm971_vm0, %v1455_v58 }
 0x32a   : > { %1470 = vrcp.f32 %v938_v59  ;;  %v937_v61 = vadd.f32 1.0, %v1457_v60 }
 0x32b   : > { %v1459_v62 = vpop.eup %1458 }
 0x32c   : > { %981 = vst.msk [vmem:[%s1731_s14 + $0x48] sm:$0xff] %vm971_vm0, %v1459_v62  ;;  %1472 = vrcp.f32 %v937_v61 }
 0x32d   : > { %v1461_v63 = vpop.eup %1460 }
 0x32e   : > { %980 = vst.msk [vmem:[%s1731_s14 + $0x40] sm:$0xff] %vm971_vm0, %v1461_v63 }
 0x32f   : > { %v1463_v0 = vpop.eup %1462 }
 0x330   : > { %983 = vst.msk [vmem:[%s1731_s14 + $0x58] sm:$0xff] %vm971_vm0, %v1463_v0 }
 0x331   : > { %v1465_v1 = vpop.eup %1464 }
 0x332   : > { %982 = vst.msk [vmem:[%s1731_s14 + $0x50] sm:$0xff] %vm971_vm0, %v1465_v1 }
 0x333   : > { %v1467_v2 = vpop.eup %1466 }
 0x334   : > { %985 = vst.msk [vmem:[%s1731_s14 + $0x68] sm:$0xff] %vm971_vm0, %v1467_v2 }
 0x335   : > { %v1469_v3 = vpop.eup %1468 }
 0x336   : > { %984 = vst.msk [vmem:[%s1731_s14 + $0x60] sm:$0xff] %vm971_vm0, %v1469_v3 }
 0x337   : > { %v1471_v4 = vpop.eup %1470 }
 0x338   : > { %987 = vst.msk [vmem:[%s1731_s14 + $0x78] sm:$0xff] %vm971_vm0, %v1471_v4 }
 0x339   : > { %v1473_v5 = vpop.eup %1472 }
 0x33a   : > { %986 = vst.msk [vmem:[%s1731_s14 + $0x70] sm:$0xff] %vm971_vm0, %v1473_v5 }
 0x33b PF: > { %s14_s12 = sadd.s32 1, %s1510_s12  }
 0x33c   : > { %p11_p1 = scmp.ge.s32.totalorder %s14_s12, 4  }
 0x33e   :  { %13 = sbr.rel (!%p11_p1) target bundleno = 1 (0x1), region = 69 }
 0x343   :  { %1010 = vsyncpa [#allocation3], 1 }
 0x344   :  { %1012 = vsyncpa [#allocation3 + $0x1], 1 }

</bundles_post_ra>
